<compile_context>
chip_gen: v7x
topology: tpu7x:2x2x1
jax: 0.10.0
libtpu: 0.0.40
codegen_flags: <defaults>
</compile_context>

<pallas_src>
import functools

import jax
import jax.numpy as jnp
from jax.experimental import pallas as pl
from jax.experimental.pallas import tpu as pltpu


def _textcnn_kernel(p_ref, w_ref, cb_ref, fcw_ref, fcb_ref, o_ref,
                    *, filter_sizes, S, F):
    Bt = p_ref.shape[0]
    KD = p_ref.shape[2]
    NF = w_ref.shape[1]

    # --- one fused MXU matmul for all filter sizes: K = k_max*D, N = n*F. ---
    patches = p_ref[...].reshape(Bt * S, KD)                      # bf16, lane-dense
    acc = jnp.dot(patches, w_ref[...], preferred_element_type=jnp.float32)
    acc = acc.reshape(Bt, S, NF)                                  # (Bt, S, n*F) f32

    # --- temporal max per filter-size segment via static slices. ------------
    # The zero-padded im2col tail rows (t > S-k) are simply excluded from the
    # slice; lane slices are F(=128)-aligned.
    pooled = jnp.concatenate(
        [jnp.max(acc[:, :S - k + 1, i * F:(i + 1) * F], axis=1)
         for i, k in enumerate(filter_sizes)], axis=1)            # (Bt, n*F) f32

    # --- bias + ReLU hoisted after the max (exact; bias constant over T). ---
    feat = jnp.maximum(pooled + cb_ref[...], 0.0)

    # --- dropout = identity (eval mode); lane-dense padded FC layer. --------
    out = jnp.dot(feat.astype(fcw_ref.dtype), fcw_ref[...],
                  preferred_element_type=jnp.float32)
    o_ref[...] = (out + fcb_ref[...]).astype(o_ref.dtype)


def textcnn_forward(x, conv_ws, conv_bs, fc_w, fc_b, filter_sizes, b_tile=None):
    """conv_ws[i]: (k_i, D, F); conv_bs[i]: (1, F); fc_w: (n*F, O); fc_b: (1, O)."""
    B, S, D = x.shape
    F = conv_ws[0].shape[-1]
    O = fc_w.shape[-1]
    n = len(filter_sizes)
    k_max = max(filter_sizes)
    assert S >= k_max, "sequence length must be >= max(filter_sizes)"
    NF = n * F
    KD = k_max * D
    O_pad = ((max(O, 1) + 127) // 128) * 128                       # lane-dense output

    # --- wrapper-side im2col: lane-dense (B, S, k_max*D) bf16 patches. ------
    # Tap i of the window at time t is x[b, t+i]; out-of-range taps are zero
    # (those rows are excluded by the per-segment static-slice max in-kernel).
    taps = [jnp.pad(x[:, i:, :], ((0, 0), (0, i), (0, 0))) for i in range(k_max)]
    patches = jnp.concatenate(taps, axis=-1).astype(jnp.bfloat16)  # (B, S, KD)

    # --- stack conv weights into one (k_max*D, n*F) block (zero-pad short
    #     filters along the tap axis); concat conv biases into (1, n*F). -----
    w_stacked = jnp.zeros((KD, NF), jnp.float32)
    for idx, k in enumerate(filter_sizes):
        for i in range(k):
            w_stacked = w_stacked.at[i * D:(i + 1) * D, idx * F:(idx + 1) * F].set(
                conv_ws[idx][i])
    w_bf = w_stacked.astype(jnp.bfloat16)
    cb = jnp.concatenate([b.reshape(1, F) for b in conv_bs], axis=1)   # (1, NF) f32

    # --- lane-dense FC: zero-pad the output dim to O_pad (=128). ------------
    fcw_pad = jnp.zeros((NF, O_pad), jnp.float32).at[:, :O].set(fc_w)
    fcw_pad = fcw_pad.astype(jnp.bfloat16)
    fcb_pad = jnp.zeros((1, O_pad), jnp.float32).at[:, :O].set(fc_b.reshape(1, O))

    # --- batch tiling: sublane-friendly, prefer >= 2 grid steps (v7x 2 TCs). -
    if b_tile is None:
        target = min(B, 512)                        # MXU M = b_tile*S rows/step
        cands = [t for t in range(1, target + 1)
                 if B % t == 0 and (t % 8 == 0 or t == B)]
        multi = [t for t in cands if B // t >= 2]
        b_tile = max(multi) if multi else max(cands)
    assert B % b_tile == 0
    grid = (B // b_tile,)

    # Explicit VMEM budget: double-buffered blocks + live f32 intermediates,
    # clamped to stay inside v7x's 64 MiB physical VMEM.
    footprint = (
        2 * b_tile * S * KD * 2            # patches blocks (bf16, dbl-buffered)
        + 2 * b_tile * O_pad * 4           # output blocks (f32, dbl-buffered)
        + 2 * (KD * NF + NF * O_pad) * 2   # weight blocks (bf16)
        + 2 * (NF + O_pad) * 4             # bias blocks (f32)
        + b_tile * S * (KD * 2 + NF * 4)   # patches value + f32 acc
        + 4 * b_tile * NF * 4              # pooled / feat temporaries
    )
    vmem_limit = int(min(max(2 * footprint, 16 << 20), 64 << 20))

    kernel = functools.partial(_textcnn_kernel,
                               filter_sizes=tuple(filter_sizes), S=S, F=F)

    out_full = pl.pallas_call(
        kernel,
        grid=grid,
        in_specs=[
            pl.BlockSpec((b_tile, S, KD), lambda b: (b, 0, 0)),    # patch tile
            pl.BlockSpec((KD, NF), lambda b: (0, 0)),              # fused conv W
            pl.BlockSpec((1, NF), lambda b: (0, 0)),               # conv biases
            pl.BlockSpec((NF, O_pad), lambda b: (0, 0)),           # fc W (padded)
            pl.BlockSpec((1, O_pad), lambda b: (0, 0)),            # fc b (padded)
        ],
        out_specs=pl.BlockSpec((b_tile, O_pad), lambda b: (b, 0)),
        out_shape=jax.ShapeDtypeStruct((B, O_pad), jnp.float32),
        compiler_params=pltpu.CompilerParams(
            dimension_semantics=("parallel",),
            vmem_limit_bytes=vmem_limit),
    )(patches, w_bf, cb, fcw_pad, fcb_pad)

    return out_full[:, :O]


def ref_forward(x, conv_ws, conv_bs, fc_w, fc_b, filter_sizes,
                mxu_dtype=jnp.float32):
    """Pure-JAX reference matching PyTorch TextCNN.forward (dropout=identity).

    `mxu_dtype` mirrors the kernel's matmul-operand precision (bf16 feed with
    f32 accumulation); all other math stays f32.
    """
    def q(a):
        return a.astype(mxu_dtype).astype(jnp.float32)

    B, S, D = x.shape
    feats = []
    for k, w, b in zip(filter_sizes, conv_ws, conv_bs):
        T = S - k + 1
        Fk = w.shape[-1]
        acc = jnp.zeros((B, T, Fk), jnp.float32)
        for i in range(k):
            acc = acc + jnp.einsum("btd,df->btf", q(x[:, i:i + T, :]), q(w[i]),
                                   preferred_element_type=jnp.float32)
        acc = jnp.maximum(acc + b, 0.0)        # bias + ReLU before pool
        feats.append(jnp.max(acc, axis=1))     # max_pool1d over time
    feat = jnp.concatenate(feats, axis=1)
    return jnp.dot(q(feat), q(fc_w), preferred_element_type=jnp.float32) + fc_b


if __name__ == "__main__":
    # Small shapes consistent with the module: input_dim=32, output_dim=8,
    # filter_sizes=(2,3,4), num_filters=128, batch=2, seq_len=8.
    B, S, D = 2, 8, 32
    F, O = 128, 8
    filter_sizes = (2, 3, 4)

    key = jax.random.PRNGKey(0)
    k_x, k_w, k_b, k_fw, k_fb = jax.random.split(key, 5)
    wkeys = jax.random.split(k_w, len(filter_sizes))
    bkeys = jax.random.split(k_b, len(filter_sizes))

    x = jax.random.normal(k_x, (B, S, D), jnp.float32)
    conv_ws = [
        0.05 * jax.random.normal(wkeys[i], (k, D, F), jnp.float32)
        for i, k in enumerate(filter_sizes)
    ]
    conv_bs = [
        0.01 * jax.random.normal(bkeys[i], (1, F), jnp.float32)
        for i in range(len(filter_sizes))
    ]
    fc_w = 0.05 * jax.random.normal(k_fw, (len(filter_sizes) * F, O), jnp.float32)
    fc_b = 0.01 * jax.random.normal(k_fb, (1, O), jnp.float32)

    out = jax.block_until_ready(
        textcnn_forward(x, conv_ws, conv_bs, fc_w, fc_b, filter_sizes)
    )
    # Reference mirrors the kernel's bf16 MXU feed (f32 everywhere else);
    # remaining difference is only f32 accumulation order (~1e-6).
    ref = ref_forward(x, conv_ws, conv_bs, fc_w, fc_b, filter_sizes,
                      mxu_dtype=jnp.bfloat16)
    assert out.shape == (B, O)
    assert jnp.allclose(out, ref, atol=1e-3, rtol=1e-3), (out, ref)
    print("KERNEL_OK")
</pallas_src>

<mosaic_0001>
module attributes {stable_mosaic.version = 11 : i64} {
  func.func @_textcnn_kernel(%arg0: i32, %arg1: memref<2x8x128xbf16, #tpu.memory_space<vmem>>, %arg2: memref<128x384xbf16, #tpu.memory_space<vmem>>, %arg3: memref<1x384xf32, #tpu.memory_space<vmem>>, %arg4: memref<384x128xbf16, #tpu.memory_space<vmem>>, %arg5: memref<1x128xf32, #tpu.memory_space<vmem>>, %arg6: memref<2x128xf32, #tpu.memory_space<vmem>>) attributes {dimension_semantics = [#tpu.dimension_semantics<parallel>], iteration_bounds = array<i64: 1>, scalar_prefetch = 0 : i64, scratch_operands = 0 : i64, tpu.core_type = #tpu.core_type<tc>, window_params = [{transform_indices = @transform_0, window_bounds = array<i64: 2, 8, 128>}, {pipeline_mode = #tpu.pipeline_mode<synchronous>, transform_indices = @transform_1, window_bounds = array<i64: 128, 384>}, {pipeline_mode = #tpu.pipeline_mode<synchronous>, transform_indices = @transform_2, window_bounds = array<i64: 1, 384>}, {pipeline_mode = #tpu.pipeline_mode<synchronous>, transform_indices = @transform_3, window_bounds = array<i64: 384, 128>}, {pipeline_mode = #tpu.pipeline_mode<synchronous>, transform_indices = @transform_4, window_bounds = array<i64: 1, 128>}, {transform_indices = @transform_5, window_bounds = array<i64: 2, 128>}]} {
    %c0 = arith.constant 0 : index
    %c0_0 = arith.constant 0 : index
    %c0_1 = arith.constant 0 : index
    %0 = vector.load %arg1[%c0, %c0_0, %c0_1] : memref<2x8x128xbf16, #tpu.memory_space<vmem>>, vector<2x8x128xbf16>
    %1 = vector.shape_cast %0 : vector<2x8x128xbf16> to vector<16x128xbf16>
    %c0_2 = arith.constant 0 : index
    %c0_3 = arith.constant 0 : index
    %2 = vector.load %arg2[%c0_2, %c0_3] : memref<128x384xbf16, #tpu.memory_space<vmem>>, vector<128x384xbf16>
    %cst = arith.constant dense<0.000000e+00> : vector<16x384xf32>
    %3 = tpu.matmul %1, %2, %cst {dimension_numbers = #tpu.dot_dimension_numbers<[1], [0], [0], [1], [0, 0, 1, 1], [], []>} : vector<16x128xbf16>, vector<128x384xbf16>, vector<16x384xf32> -> vector<16x384xf32>
    %4 = vector.shape_cast %3 : vector<16x384xf32> to vector<2x8x384xf32>
    %5 = vector.extract_strided_slice %4 {offsets = [0, 0, 0], sizes = [2, 7, 128], strides = [1, 1, 1]} : vector<2x8x384xf32> to vector<2x7x128xf32>
    %cst_4 = arith.constant dense<0xFF800000> : vector<2x128xf32>
    %6 = vector.multi_reduction <maximumf>, %5, %cst_4 [1] : vector<2x7x128xf32> to vector<2x128xf32>
    %7 = vector.extract_strided_slice %4 {offsets = [0, 0, 128], sizes = [2, 6, 128], strides = [1, 1, 1]} : vector<2x8x384xf32> to vector<2x6x128xf32>
    %cst_5 = arith.constant dense<0xFF800000> : vector<2x128xf32>
    %8 = vector.multi_reduction <maximumf>, %7, %cst_5 [1] : vector<2x6x128xf32> to vector<2x128xf32>
    %9 = vector.extract_strided_slice %4 {offsets = [0, 0, 256], sizes = [2, 5, 128], strides = [1, 1, 1]} : vector<2x8x384xf32> to vector<2x5x128xf32>
    %cst_6 = arith.constant dense<0xFF800000> : vector<2x128xf32>
    %10 = vector.multi_reduction <maximumf>, %9, %cst_6 [1] : vector<2x5x128xf32> to vector<2x128xf32>
    %11 = tpu.concatenate %6, %8, %10 in 1 : vector<2x128xf32>, vector<2x128xf32>, vector<2x128xf32> -> vector<2x384xf32>
    %c0_7 = arith.constant 0 : index
    %c0_8 = arith.constant 0 : index
    %12 = vector.load %arg3[%c0_7, %c0_8] : memref<1x384xf32, #tpu.memory_space<vmem>>, vector<1x384xf32>
    %13 = vector.broadcast %12 : vector<1x384xf32> to vector<2x384xf32>
    %14 = arith.addf %11, %13 : vector<2x384xf32>
    %cst_9 = arith.constant 0.000000e+00 : f32
    %15 = vector.broadcast %cst_9 : f32 to vector<2x384xf32>
    %16 = arith.maximumf %14, %15 : vector<2x384xf32>
    %17 = arith.truncf %16 : vector<2x384xf32> to vector<2x384xbf16>
    %c0_10 = arith.constant 0 : index
    %c0_11 = arith.constant 0 : index
    %18 = vector.load %arg4[%c0_10, %c0_11] : memref<384x128xbf16, #tpu.memory_space<vmem>>, vector<384x128xbf16>
    %cst_12 = arith.constant dense<0.000000e+00> : vector<2x128xf32>
    %19 = tpu.matmul %17, %18, %cst_12 {dimension_numbers = #tpu.dot_dimension_numbers<[1], [0], [0], [1], [0, 0, 1, 1], [], []>} : vector<2x384xbf16>, vector<384x128xbf16>, vector<2x128xf32> -> vector<2x128xf32>
    %c0_13 = arith.constant 0 : index
    %c0_14 = arith.constant 0 : index
    %20 = vector.load %arg5[%c0_13, %c0_14] : memref<1x128xf32, #tpu.memory_space<vmem>>, vector<1x128xf32>
    %21 = vector.broadcast %20 : vector<1x128xf32> to vector<2x128xf32>
    %22 = arith.addf %19, %21 : vector<2x128xf32>
    %c0_15 = arith.constant 0 : index
    %c0_16 = arith.constant 0 : index
    %23 = vector.load %arg6[%c0_15, %c0_16] : memref<2x128xf32, #tpu.memory_space<vmem>>, vector<2x128xf32>
    tpu.vector_store %arg6[%c0_15, %c0_16], %22 {strides = array<i32>} : memref<2x128xf32, #tpu.memory_space<vmem>>, vector<2x128xf32>,
    return
  }
  func.func @transform_0(%arg0: i32) -> (i32, i32, i32) {
    %c0_i32 = arith.constant 0 : i32
    %c0_i32_0 = arith.constant 0 : i32
    %c0_i32_1 = arith.constant 0 : i32
    return %arg0, %c0_i32, %c0_i32_0 : i32, i32, i32
  }
  func.func @transform_1(%arg0: i32) -> (i32, i32) {
    %c0_i32 = arith.constant 0 : i32
    %c0_i32_0 = arith.constant 0 : i32
    %c0_i32_1 = arith.constant 0 : i32
    return %c0_i32, %c0_i32_0 : i32, i32
  }
  func.func @transform_2(%arg0: i32) -> (i32, i32) {
    %c0_i32 = arith.constant 0 : i32
    %c0_i32_0 = arith.constant 0 : i32
    %c0_i32_1 = arith.constant 0 : i32
    return %c0_i32, %c0_i32_0 : i32, i32
  }
  func.func @transform_3(%arg0: i32) -> (i32, i32) {
    %c0_i32 = arith.constant 0 : i32
    %c0_i32_0 = arith.constant 0 : i32
    %c0_i32_1 = arith.constant 0 : i32
    return %c0_i32, %c0_i32_0 : i32, i32
  }
  func.func @transform_4(%arg0: i32) -> (i32, i32) {
    %c0_i32 = arith.constant 0 : i32
    %c0_i32_0 = arith.constant 0 : i32
    %c0_i32_1 = arith.constant 0 : i32
    return %c0_i32, %c0_i32_0 : i32, i32
  }
  func.func @transform_5(%arg0: i32) -> (i32, i32) {
    %c0_i32 = arith.constant 0 : i32
    %c0_i32_0 = arith.constant 0 : i32
    return %arg0, %c0_i32 : i32, i32
  }
}

</mosaic_0001>

<bundles_post_ra>
// kernel: tpu_custom_call.1
= control target key start
LH: loop header
LB: loop body
LE: loop exit
PB: predicated region body
PF: predicated region fallthrough
CT: control target
= control target key end

     0   :  { %10 = vsyncpa [#allocation3], 0  ;;  %s1106_s0 = inlined_call_operand.hbm [shape: bf16[2,8,128], index: 0, kind: input, shape index: {}]   ;;  %s1107_s1 = inlined_call_operand.hbm [shape: bf16[128,384], index: 1, kind: input, shape index: {}]   ;;  %s1108_s2 = inlined_call_operand.vmem [shape: f32[1,384], index: 2, kind: input, shape index: {}]   ;;  %s1109_s3 = inlined_call_operand.hbm [shape: bf16[384,128], index: 3, kind: input, shape index: {}]   ;;  %s1110_s4 = inlined_call_operand.vmem [shape: f32[1,128], index: 4, kind: input, shape index: {}]   ;;  %s1111_s5 = inlined_call_operand.hbm [shape: f32[2,128], index: 5, kind: output, shape index: {}]  }
   0x1   :  { %11 = vsyncpa [#allocation6], 0 }
   0x2   :  { %12 = vsyncpa [#allocation4], 0  ;;  %s987_s18 = smov [#allocation5]   ;;  %s893_s22 = scalar_lea.hbm %s1107_s1, 3072 }
   0x3   :  { %s30_s19 = sshll.u32 %s987_s18, 4  ;;  %p894_p0 = scmp.ne.s32.totalorder %s1107_s1, %s893_s22  ;;  %s31_s19 = int_to_ptr.vmem [resolvable:$true] %s30_s19 }
   0x4   :  { %p897_p1 = scmp.lt.u32.totalorder %s893_s22, %s1107_s1 }
   0x6   :  { %p899_p2 = pnand %p897_p1, %p894_p0 }
   0x8   :  { %902 = shalt.err (!%p899_p2)
}
   0x9   :  { %s903_s27 = scalar_lea.vmem %s31_s19, 3072  ;;  %p908_p4 = scmp.lt.s32.totalorder %s31_s19, %s31_s19 }
   0xa   :  { %p904_p3 = scmp.ne.s32.totalorder %s31_s19, %s903_s27  ;;  %p909_p5 = scmp.lt.s32.totalorder %s903_s27, %s903_s27 }
   0xc   :  { %p910_p6 = por %p909_p5, %p908_p4 }
   0xe   :  { %p911_p7 = pnand %p910_p6, %p904_p3 }
  0x10   :  { %914 = shalt.err (!%p911_p7)
}
  0x11   :  { %s988_s28 = smov 192   ;;  %s989_s29 = smov 12  }
  0x12   :  { %36 = dma.hbm_to_vmem [thread:$0]  %s1107_s1, 3072, %s31_s19, [#allocation6], %s988_s28, %s988_s28, %s989_s29  }
  0x13   :  { %s990_s7 = smov [#allocation2]   ;;  %s915_s11 = scalar_lea.hbm %s1106_s0, 128 }
  0x14   :  { %s18_s8 = sshll.u32 %s990_s7, 4  ;;  %p916_p8 = scmp.ne.s32.totalorder %s1106_s0, %s915_s11  ;;  %s19_s8 = int_to_ptr.vmem [resolvable:$true] %s18_s8 }
  0x15   :  { %p919_p9 = scmp.lt.u32.totalorder %s915_s11, %s1106_s0 }
  0x17   :  { %p921_p10 = pnand %p919_p9, %p916_p8 }
  0x19   :  { %924 = shalt.err (!%p921_p10)
}
  0x1a   :  { %s925_s16 = scalar_lea.vmem %s19_s8, 128  ;;  %p930_p12 = scmp.lt.s32.totalorder %s19_s8, %s19_s8 }
  0x1b   :  { %p926_p11 = scmp.ne.s32.totalorder %s19_s8, %s925_s16  ;;  %p931_p13 = scmp.lt.s32.totalorder %s925_s16, %s925_s16 }
  0x1d   :  { %p932_p0 = por %p931_p13, %p930_p12 }
  0x1f   :  { %p933_p1 = pnand %p932_p0, %p926_p11 }
  0x21   :  { %936 = shalt.err (!%p933_p1)
}
  0x22   :  { %s991_s1 = smov 64   ;;  %s992_s17 = smov 4  }
  0x23   :  { %24 = dma.hbm_to_vmem [thread:$0]  %s1106_s0, 128, %s19_s8, [#allocation3], %s991_s1, %s991_s1, %s992_s17  }
  0x24   :  { %s993_s20 = smov [#allocation7]   ;;  %s937_s24 = scalar_lea.hbm %s1109_s3, 3072 }
  0x25   :  { %s44_s21 = sshll.u32 %s993_s20, 4  ;;  %p938_p2 = scmp.ne.s32.totalorder %s1109_s3, %s937_s24  ;;  %s45_s21 = int_to_ptr.vmem [resolvable:$true] %s44_s21 }
  0x26   :  { %p941_p3 = scmp.lt.u32.totalorder %s937_s24, %s1109_s3 }
  0x28   :  { %p943_p4 = pnand %p941_p3, %p938_p2 }
  0x2a   :  { %946 = shalt.err (!%p943_p4)
}
  0x2b   :  { %s947_s29 = scalar_lea.vmem %s45_s21, 3072  ;;  %p952_p6 = scmp.lt.s32.totalorder %s45_s21, %s45_s21 }
  0x2c   :  { %p948_p5 = scmp.ne.s32.totalorder %s45_s21, %s947_s29  ;;  %p953_p7 = scmp.lt.s32.totalorder %s947_s29, %s947_s29 }
  0x2e   :  { %p954_p8 = por %p953_p7, %p952_p6 }
  0x30   :  { %p955_p9 = pnand %p954_p8, %p948_p5 }
  0x32   :  { %958 = shalt.err (!%p955_p9)
}
  0x33   :  { %50 = dma.hbm_to_vmem [thread:$0]  %s1109_s3, 3072, %s45_s21, [#allocation6], %s991_s1, %s991_s1, %s992_s17  }
  0x34   :  { %981 = dma.done.wait [#allocation3], 128  }
  0x35   :  { %982 = vsyncadd [#allocation3], 4294967168 }
  0x36   :  { %983 = dma.done.wait [#allocation6], 6144  }
  0x37   :  { %984 = vsyncadd [#allocation6], 4294961152  ;;  %v994_v0 = vmov 0.0   ;;  %vm995_vm0 = vmmov 0   ;;  %v996_v1 = vmov 0   ;;  %v870_v26 = vld [vmem:[#allocation7 + $0x40] sm:$0xff]   ;;  %v375_v55 = vlaneseq }
  0x38   :  { %785 = vmatprep.subr.bf16.mxu1 %v994_v0  ;;  %801 = vmatprep.mubr.msk.bf16.mxu1 %vm995_vm0, %v994_v0  ;;  %v836_v2 = vld [vmem:[#allocation5 + $0x4] ss:$12 sps:$4 sm:$0xff]   ;;  %v838_v3 = vld [vmem:[#allocation5 + $0x8] ss:$12 sps:$4 sm:$0xff]   ;;  %v839_v4 = vld [vmem:[#allocation5] ss:$12 sps:$4 sm:$0xff]  }
  0x39   :  { %263 = vmatprep.mubr.bf16.mxu0 %v996_v1  ;;  %231 = vmatprep.subr.bf16.mxu0 %v836_v2  ;;  %v840_v5 = vld [vmem:[#allocation5 + $0x1c] ss:$12 sps:$4 sm:$0xff]   ;;  %v842_v6 = vld [vmem:[#allocation5 + $0x20] ss:$12 sps:$4 sm:$0xff]   ;;  %v843_v7 = vld [vmem:[#allocation5 + $0x18] ss:$12 sps:$4 sm:$0xff]  }
  0x3a   :  { %786 = vmatpush3.bf16.msra.mxu1 %v838_v3  ;;  %232 = vmatpush1.bf16.msra.mxu0 %v839_v4  ;;  %v844_v8 = vld [vmem:[#allocation5 + $0x34] ss:$12 sps:$4 sm:$0xff]   ;;  %v846_v9 = vld [vmem:[#allocation5 + $0x38] ss:$12 sps:$4 sm:$0xff]   ;;  %v847_v10 = vld [vmem:[#allocation5 + $0x30] ss:$12 sps:$4 sm:$0xff]  }
  0x3b   :  { %787 = vmatprep.subr.bf16.mxu1 %v994_v0  ;;  %233 = vmatprep.subr.bf16.mxu0 %v840_v5  ;;  %v848_v11 = vld [vmem:[#allocation5 + $0x4c] ss:$12 sps:$4 sm:$0xff]   ;;  %v850_v12 = vld [vmem:[#allocation5 + $0x50] ss:$12 sps:$4 sm:$0xff]   ;;  %v851_v13 = vld [vmem:[#allocation5 + $0x48] ss:$12 sps:$4 sm:$0xff]  }
  0x3c   :  { %v852_v14 = vld [vmem:[#allocation5 + $0x64] ss:$12 sps:$4 sm:$0xff]   ;;  %v854_v15 = vld [vmem:[#allocation5 + $0x68] ss:$12 sps:$4 sm:$0xff]   ;;  %v855_v16 = vld [vmem:[#allocation5 + $0x60] ss:$12 sps:$4 sm:$0xff]  }
  0x3d   :  { %v856_v17 = vld [vmem:[#allocation5 + $0x7c] ss:$12 sps:$4 sm:$0xff]   ;;  %v858_v18 = vld [vmem:[#allocation5 + $0x80] ss:$12 sps:$4 sm:$0xff]   ;;  %v859_v19 = vld [vmem:[#allocation5 + $0x78] ss:$12 sps:$4 sm:$0xff]  }
  0x3e   :  { %788 = vmatpush3.bf16.msra.mxu1 %v842_v6  ;;  %234 = vmatpush1.bf16.msra.mxu0 %v843_v7  ;;  %v860_v20 = vld [vmem:[#allocation5 + $0x94] ss:$12 sps:$4 sm:$0xff]   ;;  %v862_v21 = vld [vmem:[#allocation5 + $0x98] ss:$12 sps:$4 sm:$0xff]   ;;  %v863_v22 = vld [vmem:[#allocation5 + $0x90] ss:$12 sps:$4 sm:$0xff]  }
  0x3f   :  { %789 = vmatprep.subr.bf16.mxu1 %v994_v0  ;;  %235 = vmatprep.subr.bf16.mxu0 %v844_v8  ;;  %v864_v23 = vld [vmem:[#allocation5 + $0xac] ss:$12 sps:$4 sm:$0xff]   ;;  %v866_v24 = vld [vmem:[#allocation5 + $0xb0] ss:$12 sps:$4 sm:$0xff]   ;;  %v867_v25 = vld [vmem:[#allocation5 + $0xa8] ss:$12 sps:$4 sm:$0xff]  }
  0x40   :  { %v868_v27 = vld [vmem:[#allocation2] sm:$0xff]   ;;  %v869_v28 = vld [vmem:[#allocation7 + $0x80] sm:$0xff]   ;;  %v873_v30 = vld [vmem:[#allocation7 + $0x48] sm:$0xff]   ;;  %vm345_vm1 = vcmask 1044480   ;;  %vm315_vm2 = vcmask 1046528   ;;  %vm330_vm3 = vcmask 1045504  }
  0x41   :  { %v871_v29 = vld [vmem:[#allocation7] sm:$0xff]   ;;  %v872_v31 = vld [vmem:[#allocation7 + $0x88] sm:$0xff]   ;;  %v875_v33 = vld [vmem:[#allocation7 + $0x90] sm:$0xff]   ;;  %vm362_vm4 = vcmask 1041409   ;;  %s997_s8 = smov [#allocation8]  }
  0x42   :  { %790 = vmatpush3.bf16.msra.mxu1 %v846_v9  ;;  %236 = vmatpush1.bf16.msra.mxu0 %v847_v10  ;;  %v874_v32 = vld [vmem:[#allocation7 + $0x8] sm:$0xff]   ;;  %v876_v34 = vld [vmem:[#allocation7 + $0x50] sm:$0xff]   ;;  %v878_v36 = vld [vmem:[#allocation7 + $0x98] sm:$0xff]   ;;  %v376_v9 = vshrl.u32 %v375_v55, 7  ;;  %s685_s9 = sshll.u32 %s997_s8, 4  ;;  %s686_s9 = int_to_ptr.vmem [resolvable:$true] %s685_s9 }
  0x43   :  { %791 = vmatprep.subr.bf16.mxu1 %v994_v0  ;;  %237 = vmatprep.subr.bf16.mxu0 %v848_v11  ;;  %v877_v35 = vld [vmem:[#allocation7 + $0x10] sm:$0xff]   ;;  %v879_v37 = vld [vmem:[#allocation7 + $0x58] sm:$0xff]   ;;  %v881_v39 = vld [vmem:[#allocation7 + $0xa0] sm:$0xff]   ;;  %s959_s10 = scalar_lea.vmem %s686_s9, 32  ;;  %p964_p11 = scmp.lt.s32.totalorder %s686_s9, %s686_s9 }
  0x44   :  { %v880_v38 = vld [vmem:[#allocation7 + $0x18] sm:$0xff]   ;;  %v882_v40 = vld [vmem:[#allocation7 + $0x60] sm:$0xff]   ;;  %v884_v42 = vld [vmem:[#allocation7 + $0xa8] sm:$0xff]   ;;  %p960_p10 = scmp.ne.s32.totalorder %s686_s9, %s959_s10  ;;  %p965_p12 = scmp.lt.s32.totalorder %s959_s10, %s959_s10 }
  0x45   :  { %v883_v41 = vld [vmem:[#allocation7 + $0x20] sm:$0xff]   ;;  %v885_v43 = vld [vmem:[#allocation7 + $0x68] sm:$0xff]   ;;  %v887_v45 = vld [vmem:[#allocation7 + $0xb0] sm:$0xff]  }
  0x46   :  { %792 = vmatpush3.bf16.msra.mxu1 %v850_v12  ;;  %238 = vmatpush1.bf16.msra.mxu0 %v851_v13  ;;  %v886_v44 = vld [vmem:[#allocation7 + $0x28] sm:$0xff]   ;;  %v888_v46 = vld [vmem:[#allocation7 + $0x70] sm:$0xff]   ;;  %v890_v48 = vld [vmem:[#allocation7 + $0xb8] sm:$0xff]   ;;  %p966_p13 = por %p965_p12, %p964_p11 }
  0x47   :  { %793 = vmatprep.subr.bf16.mxu1 %v994_v0  ;;  %239 = vmatprep.subr.bf16.mxu0 %v852_v14  ;;  %v889_v47 = vld [vmem:[#allocation7 + $0x30] sm:$0xff]   ;;  %v891_v49 = vld [vmem:[#allocation7 + $0x78] sm:$0xff]  }
  0x48   :  { %v892_v50 = vld [vmem:[#allocation7 + $0x38] sm:$0xff]   ;;  %p967_p0 = pnand %p966_p13, %p960_p10 }
  0x4a   :  { %794 = vmatpush3.bf16.msra.mxu1 %v854_v15  ;;  %240 = vmatpush1.bf16.msra.mxu0 %v855_v16 }
  0x4b   :  { %795 = vmatprep.subr.bf16.mxu1 %v994_v0  ;;  %241 = vmatprep.subr.bf16.mxu0 %v856_v17 }
  0x4e   :  { %796 = vmatpush3.bf16.msra.mxu1 %v858_v18  ;;  %242 = vmatpush1.bf16.msra.mxu0 %v859_v19 }
  0x4f   :  { %797 = vmatprep.subr.bf16.mxu1 %v994_v0  ;;  %243 = vmatprep.subr.bf16.mxu0 %v860_v20 }
  0x52   :  { %798 = vmatpush3.bf16.msra.mxu1 %v862_v21  ;;  %244 = vmatpush1.bf16.msra.mxu0 %v863_v22  ;;  %v385_v22 = vsub.s32 2, %v376_v9 }
  0x53   :  { %799 = vmatprep.subr.bf16.mxu1 %v994_v0  ;;  %245 = vmatprep.subr.bf16.mxu0 %v864_v23  ;;  %v377_v23 = vsub.s32 0, %v376_v9 }
  0x56   :  { %800 = vmatpush3.bf16.msra.mxu1 %v866_v24  ;;  %246 = vmatpush1.bf16.msra.mxu0 %v867_v25 }
  0x57   :  { %805 = vmatprep.subr.bf16.mxu1 %v994_v0  ;;  %754 = vmatprep.subr.bf16.mxu0 %v870_v26 }
  0x59   :  { %802 = vmatmul.mubr.bf16.vlgmr.msra.gmra.mrb[0].mxu1 %v868_v27  ;;  %264 = vmatmul.mubr.bf16.vlgmr.msra.gmra.mrb[0].mxu0 %v868_v27 }
  0x5a   :  { %806 = vmatpush3.bf16.msra.mxu1 %v869_v28  ;;  %755 = vmatpush3.bf16.msra.mxu0 %v871_v29  ;;  %v373_v28 = vld [vmem:[%s1108_s2] sm:$0x7] }
  0x5b   :  { %807 = vmatprep.subr.bf16.mxu1 %v994_v0  ;;  %756 = vmatprep.subr.bf16.mxu0 %v873_v30 }
  0x5c   :  { %821 = vmatprep.mubr.msk.bf16.mxu1 %vm995_vm0, %v994_v0 }
  0x5e   :  { %808 = vmatpush3.bf16.msra.mxu1 %v872_v31  ;;  %757 = vmatpush3.bf16.msra.mxu0 %v874_v32  ;;  %v381_v31 = vsub.s32 1, %v376_v9 }
  0x5f   :  { %809 = vmatprep.subr.bf16.mxu1 %v994_v0  ;;  %758 = vmatprep.subr.bf16.mxu0 %v876_v34 }
  0x62   :  { %810 = vmatpush3.bf16.msra.mxu1 %v875_v33  ;;  %759 = vmatpush3.bf16.msra.mxu0 %v877_v35 }
  0x63   :  { %811 = vmatprep.subr.bf16.mxu1 %v994_v0  ;;  %760 = vmatprep.subr.bf16.mxu0 %v879_v37  ;;  %v386_v37 = vrot.slane %v373_v28, %v385_v22 }
  0x66   :  { %812 = vmatpush3.bf16.msra.mxu1 %v878_v36  ;;  %761 = vmatpush3.bf16.msra.mxu0 %v880_v38 }
  0x67   :  { %813 = vmatprep.subr.bf16.mxu1 %v994_v0  ;;  %762 = vmatprep.subr.bf16.mxu0 %v882_v40  ;;  %v378_v40 = vrot.slane %v373_v28, %v377_v23 }
  0x6a   :  { %814 = vmatpush3.bf16.msra.mxu1 %v881_v39  ;;  %763 = vmatpush3.bf16.msra.mxu0 %v883_v41 }
  0x6b   :  { %815 = vmatprep.subr.bf16.mxu1 %v994_v0  ;;  %764 = vmatprep.subr.bf16.mxu0 %v885_v43  ;;  %v382_v43 = vrot.slane %v373_v28, %v381_v31 }
  0x6e   :  { %816 = vmatpush3.bf16.msra.mxu1 %v884_v42  ;;  %765 = vmatpush3.bf16.msra.mxu0 %v886_v44 }
  0x6f   :  { %817 = vmatprep.subr.bf16.mxu1 %v994_v0  ;;  %766 = vmatprep.subr.bf16.mxu0 %v888_v46 }
  0x72   :  { %818 = vmatpush3.bf16.msra.mxu1 %v887_v45  ;;  %767 = vmatpush3.bf16.msra.mxu0 %v889_v47 }
  0x73   :  { %819 = vmatprep.subr.bf16.mxu1 %v994_v0  ;;  %768 = vmatprep.subr.bf16.mxu0 %v891_v49 }
  0x76   :  { %820 = vmatpush3.bf16.msra.mxu1 %v890_v48  ;;  %769 = vmatpush3.bf16.msra.mxu0 %v892_v50 }
 0x12c   :  { %v308_v51 = vpop.f32.mrb[0].mxu1  ;;  %v265_v53 = vpop.f32.mrb[0].mxu0 }
 0x12d   :  { %v346_v52 = vsel %vm345_vm1, %v308_v51, -inf  ;;  %v803_v54 = vpop.f32.mrb[1].mxu1  ;;  %v316_v57 = vsel %vm315_vm2, %v265_v53, -inf  ;;  %v267_v58 = vpop.f32.mrb[1].mxu0 }
 0x12e   :  { %v347_v56 = vrot.slane %v346_v52, 4  ;;  %v311_v59 = vpop.f32.mrb[2].mxu1  ;;  %v317_v60 = vrot.slane %v316_v57, 4  ;;  %v331_v61 = vsel %vm330_vm3, %v267_v58, -inf  ;;  %v269_v63 = vpop.f32.mrb[2].mxu0 }
 0x12f   :  { %v353_v62 = vsel %vm345_vm1, %v311_v59, -inf  ;;  %v804_v0 = vpop.f32.mrb[3].mxu1  ;;  %v332_v2 = vrot.slane %v331_v61, 4  ;;  %v323_v4 = vsel %vm315_vm2, %v269_v63, -inf  ;;  %v271_v5 = vpop.f32.mrb[3].mxu0 }
 0x130   :  { %v348_v1 = vmax.f32 %v346_v52, %v347_v56  ;;  %v354_v3 = vrot.slane %v353_v62, 4  ;;  %v318_v6 = vmax.f32 %v316_v57, %v317_v60  ;;  %v324_v7 = vrot.slane %v323_v4, 4  ;;  %v720_v63 = vld [vmem:[%s1110_s4] ss:$0 sm:$0xff] }
 0x131   :  { %v338_v8 = vsel %vm330_vm3, %v271_v5, -inf  ;;  %v333_v11 = vmax.f32 %v331_v61, %v332_v2 }
 0x132   :  { %v349_v10 = vrot.slane %v348_v1, 2  ;;  %v355_v12 = vmax.f32 %v353_v62, %v354_v3  ;;  %v339_v13 = vrot.slane %v338_v8, 4  ;;  %v319_v14 = vrot.slane %v318_v6, 2 }
 0x133   :  { %v325_v15 = vmax.f32 %v323_v4, %v324_v7  ;;  %v334_v17 = vrot.slane %v333_v11, 2 }
 0x134   :  { %v350_v16 = vmax.f32 %v348_v1, %v349_v10  ;;  %v356_v18 = vrot.slane %v355_v12, 2  ;;  %v340_v19 = vmax.f32 %v338_v8, %v339_v13  ;;  %v320_v20 = vmax.f32 %v318_v6, %v319_v14 }
 0x135   :  { %v326_v21 = vrot.slane %v325_v15, 2  ;;  %v335_v25 = vmax.f32 %v333_v11, %v334_v17 }
 0x136   :  { %v351_v24 = vrot.slane %v350_v16, 1  ;;  %v357_v26 = vmax.f32 %v355_v12, %v356_v18  ;;  %v341_v27 = vrot.slane %v340_v19, 2  ;;  %v321_v29 = vrot.slane %v320_v20, 1 }
 0x137   :  { %v327_v30 = vmax.f32 %v325_v15, %v326_v21  ;;  %v336_v33 = vrot.slane %v335_v25, 1 }
 0x138   :  { %v352_v32 = vmax.f32 %v350_v16, %v351_v24  ;;  %v358_v34 = vrot.slane %v357_v26, 1  ;;  %v342_v35 = vmax.f32 %v340_v19, %v341_v27  ;;  %v322_v41 = vmax.f32 %v320_v20, %v321_v29 }
 0x139   :  { %v328_v36 = vrot.slane %v327_v30, 1  ;;  %v337_v44 = vmax.f32 %v335_v25, %v336_v33 }
 0x13a   :  { %v359_v38 = vmax.f32 %v357_v26, %v358_v34  ;;  %v343_v39 = vrot.slane %v342_v35, 1 }
 0x13b   :  { %v329_v42 = vmax.f32 %v327_v30, %v328_v36 }
 0x13c   :  { %v344_v45 = vmax.f32 %v342_v35, %v343_v39  ;;  %v371_v46 = vsel %vm362_vm4, %v359_v38, %v352_v32 }
 0x13d   :  { %v392_v47 = vadd.f32 %v386_v37, %v371_v46  ;;  %v363_v48 = vsel %vm362_vm4, %v329_v42, %v322_v41 }
 0x13e   :  { %v367_v49 = vsel %vm362_vm4, %v344_v45, %v337_v44  ;;  %v390_v50 = vadd.f32 %v378_v40, %v363_v48 }
 0x13f   :  { %v395_v51 = vmax.f32 %v392_v47, 0.0  ;;  %v391_v52 = vadd.f32 %v382_v43, %v367_v49 }
 0x140   :  { %v393_v53 = vmax.f32 %v390_v50, 0.0 }
 0x141   :  { %v398_v54 = vpack.c.bf16 %v395_v51, %v395_v51  ;;  %v394_v55 = vmax.f32 %v391_v52, 0.0 }
 0x142   :  { %v396_v57 = vpack.c.bf16 %v393_v53, %v393_v53 }
 0x143   :  { %822 = vmatmul.mubr.bf16.vlgmr.msra.gmra.mrb[4].mxu1 %v398_v54  ;;  %v397_v56 = vpack.c.bf16 %v394_v55, %v394_v55 }
 0x145   :  { %630 = vmatprep.mubr.bf16.mxu0 %v397_v56 }
 0x146   :  { %631 = vmatmul.mubr.bf16.vlgmr.msra.gmra.mrb[4].mxu0 %v396_v57 }
 0x216   :  { %v672_v58 = vpop.f32.mrb[4].mxu1 }
 0x217   :  { %v823_v59 = vpop.f32.mrb[5].mxu1 }
 0x218   :  { %v675_v60 = vpop.f32.mrb[6].mxu1 }
 0x219   :  { %v770_v61 = vpop.f32.mrb[4].mxu0  ;;  %v824_v62 = vpop.f32.mrb[7].mxu1 }
 0x21a   :  { %v771_v0 = vpop.f32.mrb[5].mxu0 }
 0x21b   :  { %v772_v1 = vadd.f32 %v771_v0, %v770_v61  ;;  %v773_v2 = vpop.f32.mrb[6].mxu0 }
 0x21c   :  { %v774_v3 = vpop.f32.mrb[7].mxu0 }
 0x21d   :  { %v633_v4 = vadd.f32 %v772_v1, %v720_v63 }
 0x21f   :  { %v673_v5 = vadd.f32 %v672_v58, %v633_v4 }
 0x221   :  { %678 = vst [vmem:[#allocation8] sm:$0x3] %v673_v5 }
 0x222   :  { %970 = shalt.err (!%p967_p0)
}
 0x223   :  { %s971_s4 = scalar_lea.hbm %s1111_s5, 32 }
 0x224   :  { %p972_p1 = scmp.ne.s32.totalorder %s1111_s5, %s971_s4  ;;  %p975_p2 = scmp.lt.u32.totalorder %s971_s4, %s1111_s5 }
 0x226   :  { %p977_p3 = pnand %p975_p2, %p972_p1 }
 0x228   :  { %980 = shalt.err (!%p977_p3)
}
 0x229   :  { %688 = dma.vmem_to_hbm [thread:$0]  %s686_s9, 32, %s1111_s5, [#allocation4]  }
 0x22a   :  { %985 = dma.done.wait [#allocation4], 32  }
 0x22b   :  { %986 = vsyncadd [#allocation4], 4294967264 }
 0x22c   :  { %692 = vsyncpa [#allocation3], 1 }
 0x22d   :  { %693 = vsyncpa [#allocation6], 1 }
 0x22e   :  { %694 = vsyncpa [#allocation4], 1 }

</bundles_post_ra>
